<compile_context>
chip_gen: v7x
topology: tpu7x:2x2x1
jax: 0.10.0
libtpu: 0.0.40
codegen_flags: <defaults>
</compile_context>

<pallas_src>
import math

import jax
import jax.numpy as jnp
from jax.experimental import pallas as pl
from jax.experimental.pallas import tpu as pltpu

# ---------------- problem sizes (small, consistent with the module) ----------------
BATCH = 2
SEQ = 8
D_MODEL = 32
NUM_HEADS = 4
D_FF = 64
LN_EPS = 1e-5


# ---------------------------------- Pallas kernel ----------------------------------
def encoder_layer_kernel(x_ref,
                         wqkv_ref, bqkv_ref, wo_ref, bo_ref,
                         w1_ref, b1_ref, w2_ref, b2_ref,
                         g1_ref, be1_ref, g2_ref, be2_ref,
                         hmask_ref, amask_ref, bsum_ref,
                         out_ref):
    H = NUM_HEADS
    D = D_MODEL
    dh = D // H
    scale = 1.0 / math.sqrt(dh)
    bf16 = jnp.bfloat16
    f32 = jnp.float32

    x = x_ref[...]                                          # (B*S, D), f32

    # --- fused QKV projection: one (B*S, D) @ (D, 3D) matmul, bf16 operands, f32 acc
    qkv = jnp.dot(x.astype(bf16), wqkv_ref[...].astype(bf16),
                  preferred_element_type=f32) + bqkv_ref[...]        # (B*S, 3D)
    q = qkv[:, 0 * D:1 * D] * scale                                  # (B*S, D)
    k = qkv[:, 1 * D:2 * D]
    v = qkv[:, 2 * D:3 * D]

    # --- all heads + all batches at once via block-diagonal masking.
    # Score-space columns are indexed c = head * (B*S) + row'; hmask zeroes the
    # feature lanes that do not belong to column c's head, amask zeroes cross-batch
    # pairs, bsum is a block-diagonal matrix of ones that computes per-(head,batch)
    # softmax denominators with a matmul.
    hmask = hmask_ref[...]                                  # (H*B*S, D)
    k_bd = jnp.tile(k, (H, 1)) * hmask                      # (H*B*S, D)
    v_bd = jnp.tile(v, (H, 1)) * hmask                      # (H*B*S, D)

    s = jnp.einsum('nd,cd->nc', q.astype(bf16), k_bd.astype(bf16),
                   preferred_element_type=f32)              # (B*S, H*B*S) head-wise scores
    s = s - jnp.max(s, axis=-1, keepdims=True)              # per-row constant shift (safe)
    amask = amask_ref[...]                                  # (B*S, H*B*S)
    p = jnp.exp(s) * amask                                  # invalid (cross-batch) -> 0
    denom = jnp.dot(p.astype(bf16), bsum_ref[...].astype(bf16),
                    preferred_element_type=f32)             # per-(head,batch) block sums
    # +(1-amask) keeps masked columns' denominator at 1 -> weight exactly 0 (no inf/NaN)
    attn_w = p * pl.reciprocal(denom + (1.0 - amask), approx=True)
    attn = jnp.dot(attn_w.astype(bf16), v_bd.astype(bf16),
                   preferred_element_type=f32)              # (B*S, D) = concat'd head outs

    attn = jnp.dot(attn.astype(bf16), wo_ref[...].astype(bf16),
                   preferred_element_type=f32) + bo_ref[...]

    def layer_norm(y, gamma, beta):
        mu = jnp.mean(y, axis=-1, keepdims=True)
        var = jnp.mean((y - mu) ** 2, axis=-1, keepdims=True)
        return (y - mu) * jax.lax.rsqrt(var + LN_EPS) * gamma + beta

    # --- sublayer 1: residual + LayerNorm (f32)
    sub1 = layer_norm(x + attn, g1_ref[...], be1_ref[...])

    # --- position-wise FFN on the full (B*S, D) slab
    h1 = jnp.dot(sub1.astype(bf16), w1_ref[...].astype(bf16),
                 preferred_element_type=f32) + b1_ref[...]
    h1 = jnp.maximum(h1, 0.0)
    ff = jnp.dot(h1.astype(bf16), w2_ref[...].astype(bf16),
                 preferred_element_type=f32) + b2_ref[...]

    # --- sublayer 2: residual + LayerNorm; single full-block store
    out_ref[...] = layer_norm(sub1 + ff, g2_ref[...], be2_ref[...])


# ----------------------------------- wrapper ---------------------------------------
def encoder_layer(x, params):
    B, S, D = x.shape
    H = NUM_HEADS
    dh = D // H
    BS = B * S
    HBS = H * BS

    # Flatten activations to a (B*S, D) slab; only the score/softmax step needs
    # per-batch separation and that is handled by the masks below.
    x2 = x.reshape(BS, D)

    # Fuse Q/K/V weights & biases host-side: one MXU weight latch instead of three.
    wqkv = jnp.concatenate([params["wq"], params["wk"], params["wv"]], axis=1)   # (D, 3D)
    bqkv = jnp.concatenate([params["bq"], params["bk"], params["bv"]], axis=1)   # (1, 3D)

    # Host-precomputed 0/1 masks (tiny constants).
    c = jnp.arange(HBS)
    d = jnp.arange(D)
    r = jnp.arange(BS)
    head_mask = (d[None, :] // dh == c[:, None] // BS).astype(jnp.float32)       # (HBS, D)
    attn_mask = (r[:, None] // S == (c[None, :] % BS) // S).astype(jnp.float32)  # (BS, HBS)
    block_sum = (c[:, None] // S == c[None, :] // S).astype(jnp.float32)         # (HBS, HBS)

    args = [x2, wqkv, bqkv, params["wo"], params["bo"],
            params["w1"], params["b1"], params["w2"], params["b2"],
            params["g1"], params["be1"], params["g2"], params["be2"],
            head_mask, attn_mask, block_sum]

    out2 = pl.pallas_call(
        encoder_layer_kernel,
        out_shape=jax.ShapeDtypeStruct((BS, D), jnp.float32),
        grid_spec=pltpu.PrefetchScalarGridSpec(
            num_scalar_prefetch=0,
            grid=(1,),                                   # single step: whole problem at once
            in_specs=[pl.BlockSpec(a.shape, lambda i: (0, 0)) for a in args],
            out_specs=pl.BlockSpec((BS, D), lambda i: (0, 0)),
        ),
        compiler_params=pltpu.CompilerParams(
            dimension_semantics=("arbitrary",),
            vmem_limit_bytes=16 * 1024 * 1024,
        ),
    )(*args)
    return out2.reshape(B, S, D)


# ----------------------------- pure-JAX reference -----------------------------------
def encoder_layer_ref(x, p):
    dh = D_MODEL // NUM_HEADS
    scale = 1.0 / math.sqrt(dh)

    def ln(y, g, b):
        mu = jnp.mean(y, axis=-1, keepdims=True)
        var = jnp.mean((y - mu) ** 2, axis=-1, keepdims=True)
        return (y - mu) / jnp.sqrt(var + LN_EPS) * g + b

    q = x @ p["wq"] + p["bq"]
    k = x @ p["wk"] + p["bk"]
    v = x @ p["wv"] + p["bv"]
    B, S, D = x.shape
    q = q.reshape(B, S, NUM_HEADS, dh).transpose(0, 2, 1, 3)
    k = k.reshape(B, S, NUM_HEADS, dh).transpose(0, 2, 1, 3)
    v = v.reshape(B, S, NUM_HEADS, dh).transpose(0, 2, 1, 3)
    s = jnp.einsum("bhqd,bhkd->bhqk", q, k) * scale
    pw = jax.nn.softmax(s, axis=-1)
    a = jnp.einsum("bhqk,bhkd->bhqd", pw, v).transpose(0, 2, 1, 3).reshape(B, S, D)
    attn = a @ p["wo"] + p["bo"]
    sub1 = ln(x + attn, p["g1"], p["be1"])
    ff = jnp.maximum(sub1 @ p["w1"] + p["b1"], 0.0) @ p["w2"] + p["b2"]
    return ln(sub1 + ff, p["g2"], p["be2"])


# -------------------------------------- main -----------------------------------------
def make_params(key):
    ks = jax.random.split(key, 16)
    std = 0.02

    def rnd(k, shape, s=std):
        return jax.random.normal(k, shape, jnp.float32) * s

    return {
        "wq": rnd(ks[0], (D_MODEL, D_MODEL)),
        "wk": rnd(ks[1], (D_MODEL, D_MODEL)),
        "wv": rnd(ks[2], (D_MODEL, D_MODEL)),
        "wo": rnd(ks[3], (D_MODEL, D_MODEL)),
        "w1": rnd(ks[4], (D_MODEL, D_FF)),
        "w2": rnd(ks[5], (D_FF, D_MODEL)),
        # biases kept 2-D (1, features) for TPU-friendly layout
        "bq": rnd(ks[6], (1, D_MODEL)),
        "bk": rnd(ks[7], (1, D_MODEL)),
        "bv": rnd(ks[8], (1, D_MODEL)),
        "bo": rnd(ks[9], (1, D_MODEL)),
        "b1": rnd(ks[10], (1, D_FF)),
        "b2": rnd(ks[11], (1, D_MODEL)),
        "g1": 1.0 + rnd(ks[12], (1, D_MODEL), 0.1),
        "be1": rnd(ks[13], (1, D_MODEL), 0.1),
        "g2": 1.0 + rnd(ks[14], (1, D_MODEL), 0.1),
        "be2": rnd(ks[15], (1, D_MODEL), 0.1),
    }


if __name__ == "__main__":
    key = jax.random.PRNGKey(0)
    k_x, k_p = jax.random.split(key)
    x = jax.random.normal(k_x, (BATCH, SEQ, D_MODEL), jnp.float32)
    params = make_params(k_p)

    out = jax.block_until_ready(encoder_layer(x, params))
    ref = encoder_layer_ref(x, params)

    assert out.shape == (BATCH, SEQ, D_MODEL)
    # bf16 MXU operands + approx reciprocal => relax tolerance vs. pure-f32 reference.
    err = float(jnp.max(jnp.abs(out - ref)))
    assert jnp.allclose(out, ref, rtol=2e-2, atol=2e-2), err

    print("KERNEL_OK")
</pallas_src>

<mosaic_0001>
module attributes {stable_mosaic.version = 11 : i64} {
  func.func @encoder_layer_kernel(%arg0: i32, %arg1: memref<16x32xf32, #tpu.memory_space<vmem>>, %arg2: memref<32x96xf32, #tpu.memory_space<vmem>>, %arg3: memref<1x96xf32, #tpu.memory_space<vmem>>, %arg4: memref<32x32xf32, #tpu.memory_space<vmem>>, %arg5: memref<1x32xf32, #tpu.memory_space<vmem>>, %arg6: memref<32x64xf32, #tpu.memory_space<vmem>>, %arg7: memref<1x64xf32, #tpu.memory_space<vmem>>, %arg8: memref<64x32xf32, #tpu.memory_space<vmem>>, %arg9: memref<1x32xf32, #tpu.memory_space<vmem>>, %arg10: memref<1x32xf32, #tpu.memory_space<vmem>>, %arg11: memref<1x32xf32, #tpu.memory_space<vmem>>, %arg12: memref<1x32xf32, #tpu.memory_space<vmem>>, %arg13: memref<1x32xf32, #tpu.memory_space<vmem>>, %arg14: memref<64x32xf32, #tpu.memory_space<vmem>>, %arg15: memref<16x64xf32, #tpu.memory_space<vmem>>, %arg16: memref<64x64xf32, #tpu.memory_space<vmem>>, %arg17: memref<16x32xf32, #tpu.memory_space<vmem>>) attributes {dimension_semantics = [#tpu.dimension_semantics<arbitrary>], iteration_bounds = array<i64: 1>, scalar_prefetch = 0 : i64, scratch_operands = 0 : i64, tpu.core_type = #tpu.core_type<tc>, window_params = [{pipeline_mode = #tpu.pipeline_mode<synchronous>, transform_indices = @transform_0, window_bounds = array<i64: 16, 32>}, {pipeline_mode = #tpu.pipeline_mode<synchronous>, transform_indices = @transform_1, window_bounds = array<i64: 32, 96>}, {pipeline_mode = #tpu.pipeline_mode<synchronous>, transform_indices = @transform_2, window_bounds = array<i64: 1, 96>}, {pipeline_mode = #tpu.pipeline_mode<synchronous>, transform_indices = @transform_3, window_bounds = array<i64: 32, 32>}, {pipeline_mode = #tpu.pipeline_mode<synchronous>, transform_indices = @transform_4, window_bounds = array<i64: 1, 32>}, {pipeline_mode = #tpu.pipeline_mode<synchronous>, transform_indices = @transform_5, window_bounds = array<i64: 32, 64>}, {pipeline_mode = #tpu.pipeline_mode<synchronous>, transform_indices = @transform_6, window_bounds = array<i64: 1, 64>}, {pipeline_mode = #tpu.pipeline_mode<synchronous>, transform_indices = @transform_7, window_bounds = array<i64: 64, 32>}, {pipeline_mode = #tpu.pipeline_mode<synchronous>, transform_indices = @transform_8, window_bounds = array<i64: 1, 32>}, {pipeline_mode = #tpu.pipeline_mode<synchronous>, transform_indices = @transform_9, window_bounds = array<i64: 1, 32>}, {pipeline_mode = #tpu.pipeline_mode<synchronous>, transform_indices = @transform_10, window_bounds = array<i64: 1, 32>}, {pipeline_mode = #tpu.pipeline_mode<synchronous>, transform_indices = @transform_11, window_bounds = array<i64: 1, 32>}, {pipeline_mode = #tpu.pipeline_mode<synchronous>, transform_indices = @transform_12, window_bounds = array<i64: 1, 32>}, {pipeline_mode = #tpu.pipeline_mode<synchronous>, transform_indices = @transform_13, window_bounds = array<i64: 64, 32>}, {pipeline_mode = #tpu.pipeline_mode<synchronous>, transform_indices = @transform_14, window_bounds = array<i64: 16, 64>}, {pipeline_mode = #tpu.pipeline_mode<synchronous>, transform_indices = @transform_15, window_bounds = array<i64: 64, 64>}, {pipeline_mode = #tpu.pipeline_mode<synchronous>, transform_indices = @transform_16, window_bounds = array<i64: 16, 32>}]} {
    %c0 = arith.constant 0 : index
    %c0_0 = arith.constant 0 : index
    %0 = vector.load %arg1[%c0, %c0_0] : memref<16x32xf32, #tpu.memory_space<vmem>>, vector<16x32xf32>
    %1 = arith.truncf %0 : vector<16x32xf32> to vector<16x32xbf16>
    %c0_1 = arith.constant 0 : index
    %c0_2 = arith.constant 0 : index
    %2 = vector.load %arg2[%c0_1, %c0_2] : memref<32x96xf32, #tpu.memory_space<vmem>>, vector<32x96xf32>
    %3 = arith.truncf %2 : vector<32x96xf32> to vector<32x96xbf16>
    %cst = arith.constant dense<0.000000e+00> : vector<16x96xf32>
    %4 = tpu.matmul %1, %3, %cst {dimension_numbers = #tpu.dot_dimension_numbers<[1], [0], [0], [1], [0, 0, 1, 1], [], []>} : vector<16x32xbf16>, vector<32x96xbf16>, vector<16x96xf32> -> vector<16x96xf32>
    %c0_3 = arith.constant 0 : index
    %c0_4 = arith.constant 0 : index
    %5 = vector.load %arg3[%c0_3, %c0_4] : memref<1x96xf32, #tpu.memory_space<vmem>>, vector<1x96xf32>
    %6 = vector.broadcast %5 : vector<1x96xf32> to vector<16x96xf32>
    %7 = arith.addf %4, %6 : vector<16x96xf32>
    %8 = vector.extract_strided_slice %7 {offsets = [0, 0], sizes = [16, 32], strides = [1, 1]} : vector<16x96xf32> to vector<16x32xf32>
    %cst_5 = arith.constant 0.353553385 : f32
    %9 = vector.broadcast %cst_5 : f32 to vector<16x32xf32>
    %10 = arith.mulf %8, %9 : vector<16x32xf32>
    %11 = vector.extract_strided_slice %7 {offsets = [0, 32], sizes = [16, 32], strides = [1, 1]} : vector<16x96xf32> to vector<16x32xf32>
    %12 = vector.extract_strided_slice %7 {offsets = [0, 64], sizes = [16, 32], strides = [1, 1]} : vector<16x96xf32> to vector<16x32xf32>
    %c0_6 = arith.constant 0 : index
    %c0_7 = arith.constant 0 : index
    %13 = vector.load %arg14[%c0_6, %c0_7] : memref<64x32xf32, #tpu.memory_space<vmem>>, vector<64x32xf32>
    %14 = tpu.concatenate %11, %11, %11, %11 in 0 : vector<16x32xf32>, vector<16x32xf32>, vector<16x32xf32>, vector<16x32xf32> -> vector<64x32xf32>
    %15 = arith.mulf %14, %13 : vector<64x32xf32>
    %16 = tpu.concatenate %12, %12, %12, %12 in 0 : vector<16x32xf32>, vector<16x32xf32>, vector<16x32xf32>, vector<16x32xf32> -> vector<64x32xf32>
    %17 = arith.mulf %16, %13 : vector<64x32xf32>
    %18 = arith.truncf %10 : vector<16x32xf32> to vector<16x32xbf16>
    %19 = arith.truncf %15 : vector<64x32xf32> to vector<64x32xbf16>
    "tpu.trace_start"() <{level = 10 : i32, message = "nd,cd->nc"}> : () -> ()
    %cst_8 = arith.constant dense<0.000000e+00> : vector<16x64xf32>
    %20 = tpu.matmul %18, %19, %cst_8 {dimension_numbers = #tpu.dot_dimension_numbers<[1], [1], [0], [0], [0, 0, 1, 0], [], []>} : vector<16x32xbf16>, vector<64x32xbf16>, vector<16x64xf32> -> vector<16x64xf32>
    "tpu.trace_stop"() : () -> ()
    %cst_9 = arith.constant dense<0xFF800000> : vector<16xf32>
    %21 = vector.multi_reduction <maximumf>, %20, %cst_9 [1] : vector<16x64xf32> to vector<16xf32>
    %22 = vector.shape_cast %21 : vector<16xf32> to vector<16x1xf32>
    %23 = vector.broadcast %22 : vector<16x1xf32> to vector<16x64xf32>
    %24 = arith.subf %20, %23 : vector<16x64xf32>
    %c0_10 = arith.constant 0 : index
    %c0_11 = arith.constant 0 : index
    %25 = vector.load %arg15[%c0_10, %c0_11] : memref<16x64xf32, #tpu.memory_space<vmem>>, vector<16x64xf32>
    %26 = math.exp %24 : vector<16x64xf32>
    %27 = arith.mulf %26, %25 : vector<16x64xf32>
    %28 = arith.truncf %27 : vector<16x64xf32> to vector<16x64xbf16>
    %c0_12 = arith.constant 0 : index
    %c0_13 = arith.constant 0 : index
    %29 = vector.load %arg16[%c0_12, %c0_13] : memref<64x64xf32, #tpu.memory_space<vmem>>, vector<64x64xf32>
    %30 = arith.truncf %29 : vector<64x64xf32> to vector<64x64xbf16>
    %cst_14 = arith.constant dense<0.000000e+00> : vector<16x64xf32>
    %31 = tpu.matmul %28, %30, %cst_14 {dimension_numbers = #tpu.dot_dimension_numbers<[1], [0], [0], [1], [0, 0, 1, 1], [], []>} : vector<16x64xbf16>, vector<64x64xbf16>, vector<16x64xf32> -> vector<16x64xf32>
    %cst_15 = arith.constant 1.000000e+00 : f32
    %32 = vector.broadcast %cst_15 : f32 to vector<16x64xf32>
    %33 = arith.subf %32, %25 : vector<16x64xf32>
    %34 = arith.addf %31, %33 : vector<16x64xf32>
    %35 = tpu.reciprocal %34 {approx = true} : vector<16x64xf32> -> vector<16x64xf32>
    %36 = arith.mulf %27, %35 : vector<16x64xf32>
    %37 = arith.truncf %36 : vector<16x64xf32> to vector<16x64xbf16>
    %38 = arith.truncf %17 : vector<64x32xf32> to vector<64x32xbf16>
    %cst_16 = arith.constant dense<0.000000e+00> : vector<16x32xf32>
    %39 = tpu.matmul %37, %38, %cst_16 {dimension_numbers = #tpu.dot_dimension_numbers<[1], [0], [0], [1], [0, 0, 1, 1], [], []>} : vector<16x64xbf16>, vector<64x32xbf16>, vector<16x32xf32> -> vector<16x32xf32>
    %40 = arith.truncf %39 : vector<16x32xf32> to vector<16x32xbf16>
    %c0_17 = arith.constant 0 : index
    %c0_18 = arith.constant 0 : index
    %41 = vector.load %arg4[%c0_17, %c0_18] : memref<32x32xf32, #tpu.memory_space<vmem>>, vector<32x32xf32>
    %42 = arith.truncf %41 : vector<32x32xf32> to vector<32x32xbf16>
    %cst_19 = arith.constant dense<0.000000e+00> : vector<16x32xf32>
    %43 = tpu.matmul %40, %42, %cst_19 {dimension_numbers = #tpu.dot_dimension_numbers<[1], [0], [0], [1], [0, 0, 1, 1], [], []>} : vector<16x32xbf16>, vector<32x32xbf16>, vector<16x32xf32> -> vector<16x32xf32>
    %c0_20 = arith.constant 0 : index
    %c0_21 = arith.constant 0 : index
    %44 = vector.load %arg5[%c0_20, %c0_21] : memref<1x32xf32, #tpu.memory_space<vmem>>, vector<1x32xf32>
    %45 = vector.broadcast %44 : vector<1x32xf32> to vector<16x32xf32>
    %46 = arith.addf %43, %45 : vector<16x32xf32>
    %47 = arith.addf %0, %46 : vector<16x32xf32>
    %c0_22 = arith.constant 0 : index
    %c0_23 = arith.constant 0 : index
    %48 = vector.load %arg10[%c0_22, %c0_23] : memref<1x32xf32, #tpu.memory_space<vmem>>, vector<1x32xf32>
    %c0_24 = arith.constant 0 : index
    %c0_25 = arith.constant 0 : index
    %49 = vector.load %arg11[%c0_24, %c0_25] : memref<1x32xf32, #tpu.memory_space<vmem>>, vector<1x32xf32>
    %cst_26 = arith.constant dense<0.000000e+00> : vector<16xf32>
    %50 = vector.multi_reduction <add>, %47, %cst_26 [1] : vector<16x32xf32> to vector<16xf32>
    %51 = vector.shape_cast %50 : vector<16xf32> to vector<16x1xf32>
    %cst_27 = arith.constant 3.200000e+01 : f32
    %52 = vector.broadcast %cst_27 : f32 to vector<16x1xf32>
    %53 = arith.divf %51, %52 : vector<16x1xf32>
    %54 = vector.broadcast %53 : vector<16x1xf32> to vector<16x32xf32>
    %55 = arith.subf %47, %54 : vector<16x32xf32>
    %56 = arith.mulf %55, %55 : vector<16x32xf32>
    %cst_28 = arith.constant dense<0.000000e+00> : vector<16xf32>
    %57 = vector.multi_reduction <add>, %56, %cst_28 [1] : vector<16x32xf32> to vector<16xf32>
    %58 = vector.shape_cast %57 : vector<16xf32> to vector<16x1xf32>
    %cst_29 = arith.constant 3.200000e+01 : f32
    %59 = vector.broadcast %cst_29 : f32 to vector<16x1xf32>
    %60 = arith.divf %58, %59 : vector<16x1xf32>
    %61 = vector.broadcast %53 : vector<16x1xf32> to vector<16x32xf32>
    %62 = arith.subf %47, %61 : vector<16x32xf32>
    %cst_30 = arith.constant 9.99999974E-6 : f32
    %63 = vector.broadcast %cst_30 : f32 to vector<16x1xf32>
    %64 = arith.addf %60, %63 : vector<16x1xf32>
    %65 = math.rsqrt %64 : vector<16x1xf32>
    %66 = vector.broadcast %65 : vector<16x1xf32> to vector<16x32xf32>
    %67 = arith.mulf %62, %66 : vector<16x32xf32>
    %68 = vector.broadcast %48 : vector<1x32xf32> to vector<16x32xf32>
    %69 = arith.mulf %67, %68 : vector<16x32xf32>
    %70 = vector.broadcast %49 : vector<1x32xf32> to vector<16x32xf32>
    %71 = arith.addf %69, %70 : vector<16x32xf32>
    %72 = arith.truncf %71 : vector<16x32xf32> to vector<16x32xbf16>
    %c0_31 = arith.constant 0 : index
    %c0_32 = arith.constant 0 : index
    %73 = vector.load %arg6[%c0_31, %c0_32] : memref<32x64xf32, #tpu.memory_space<vmem>>, vector<32x64xf32>
    %74 = arith.truncf %73 : vector<32x64xf32> to vector<32x64xbf16>
    %cst_33 = arith.constant dense<0.000000e+00> : vector<16x64xf32>
    %75 = tpu.matmul %72, %74, %cst_33 {dimension_numbers = #tpu.dot_dimension_numbers<[1], [0], [0], [1], [0, 0, 1, 1], [], []>} : vector<16x32xbf16>, vector<32x64xbf16>, vector<16x64xf32> -> vector<16x64xf32>
    %c0_34 = arith.constant 0 : index
    %c0_35 = arith.constant 0 : index
    %76 = vector.load %arg7[%c0_34, %c0_35] : memref<1x64xf32, #tpu.memory_space<vmem>>, vector<1x64xf32>
    %77 = vector.broadcast %76 : vector<1x64xf32> to vector<16x64xf32>
    %78 = arith.addf %75, %77 : vector<16x64xf32>
    %cst_36 = arith.constant 0.000000e+00 : f32
    %79 = vector.broadcast %cst_36 : f32 to vector<16x64xf32>
    %80 = arith.maximumf %78, %79 : vector<16x64xf32>
    %81 = arith.truncf %80 : vector<16x64xf32> to vector<16x64xbf16>
    %c0_37 = arith.constant 0 : index
    %c0_38 = arith.constant 0 : index
    %82 = vector.load %arg8[%c0_37, %c0_38] : memref<64x32xf32, #tpu.memory_space<vmem>>, vector<64x32xf32>
    %83 = arith.truncf %82 : vector<64x32xf32> to vector<64x32xbf16>
    %cst_39 = arith.constant dense<0.000000e+00> : vector<16x32xf32>
    %84 = tpu.matmul %81, %83, %cst_39 {dimension_numbers = #tpu.dot_dimension_numbers<[1], [0], [0], [1], [0, 0, 1, 1], [], []>} : vector<16x64xbf16>, vector<64x32xbf16>, vector<16x32xf32> -> vector<16x32xf32>
    %c0_40 = arith.constant 0 : index
    %c0_41 = arith.constant 0 : index
    %85 = vector.load %arg9[%c0_40, %c0_41] : memref<1x32xf32, #tpu.memory_space<vmem>>, vector<1x32xf32>
    %86 = vector.broadcast %85 : vector<1x32xf32> to vector<16x32xf32>
    %87 = arith.addf %84, %86 : vector<16x32xf32>
    %88 = arith.addf %71, %87 : vector<16x32xf32>
    %c0_42 = arith.constant 0 : index
    %c0_43 = arith.constant 0 : index
    %89 = vector.load %arg12[%c0_42, %c0_43] : memref<1x32xf32, #tpu.memory_space<vmem>>, vector<1x32xf32>
    %c0_44 = arith.constant 0 : index
    %c0_45 = arith.constant 0 : index
    %90 = vector.load %arg13[%c0_44, %c0_45] : memref<1x32xf32, #tpu.memory_space<vmem>>, vector<1x32xf32>
    %cst_46 = arith.constant dense<0.000000e+00> : vector<16xf32>
    %91 = vector.multi_reduction <add>, %88, %cst_46 [1] : vector<16x32xf32> to vector<16xf32>
    %92 = vector.shape_cast %91 : vector<16xf32> to vector<16x1xf32>
    %cst_47 = arith.constant 3.200000e+01 : f32
    %93 = vector.broadcast %cst_47 : f32 to vector<16x1xf32>
    %94 = arith.divf %92, %93 : vector<16x1xf32>
    %95 = vector.broadcast %94 : vector<16x1xf32> to vector<16x32xf32>
    %96 = arith.subf %88, %95 : vector<16x32xf32>
    %97 = arith.mulf %96, %96 : vector<16x32xf32>
    %cst_48 = arith.constant dense<0.000000e+00> : vector<16xf32>
    %98 = vector.multi_reduction <add>, %97, %cst_48 [1] : vector<16x32xf32> to vector<16xf32>
    %99 = vector.shape_cast %98 : vector<16xf32> to vector<16x1xf32>
    %cst_49 = arith.constant 3.200000e+01 : f32
    %100 = vector.broadcast %cst_49 : f32 to vector<16x1xf32>
    %101 = arith.divf %99, %100 : vector<16x1xf32>
    %102 = vector.broadcast %94 : vector<16x1xf32> to vector<16x32xf32>
    %103 = arith.subf %88, %102 : vector<16x32xf32>
    %cst_50 = arith.constant 9.99999974E-6 : f32
    %104 = vector.broadcast %cst_50 : f32 to vector<16x1xf32>
    %105 = arith.addf %101, %104 : vector<16x1xf32>
    %106 = math.rsqrt %105 : vector<16x1xf32>
    %107 = vector.broadcast %106 : vector<16x1xf32> to vector<16x32xf32>
    %108 = arith.mulf %103, %107 : vector<16x32xf32>
    %109 = vector.broadcast %89 : vector<1x32xf32> to vector<16x32xf32>
    %110 = arith.mulf %108, %109 : vector<16x32xf32>
    %111 = vector.broadcast %90 : vector<1x32xf32> to vector<16x32xf32>
    %112 = arith.addf %110, %111 : vector<16x32xf32>
    %c0_51 = arith.constant 0 : index
    %c0_52 = arith.constant 0 : index
    %113 = vector.load %arg17[%c0_51, %c0_52] : memref<16x32xf32, #tpu.memory_space<vmem>>, vector<16x32xf32>
    tpu.vector_store %arg17[%c0_51, %c0_52], %112 {strides = array<i32>} : memref<16x32xf32, #tpu.memory_space<vmem>>, vector<16x32xf32>,
    return
  }
  func.func @transform_0(%arg0: i32) -> (i32, i32) {
    %c0_i32 = arith.constant 0 : i32
    %c0_i32_0 = arith.constant 0 : i32
    %c0_i32_1 = arith.constant 0 : i32
    return %c0_i32, %c0_i32_0 : i32, i32
  }
  func.func @transform_1(%arg0: i32) -> (i32, i32) {
    %c0_i32 = arith.constant 0 : i32
    %c0_i32_0 = arith.constant 0 : i32
    %c0_i32_1 = arith.constant 0 : i32
    return %c0_i32, %c0_i32_0 : i32, i32
  }
  func.func @transform_2(%arg0: i32) -> (i32, i32) {
    %c0_i32 = arith.constant 0 : i32
    %c0_i32_0 = arith.constant 0 : i32
    %c0_i32_1 = arith.constant 0 : i32
    return %c0_i32, %c0_i32_0 : i32, i32
  }
  func.func @transform_3(%arg0: i32) -> (i32, i32) {
    %c0_i32 = arith.constant 0 : i32
    %c0_i32_0 = arith.constant 0 : i32
    %c0_i32_1 = arith.constant 0 : i32
    return %c0_i32, %c0_i32_0 : i32, i32
  }
  func.func @transform_4(%arg0: i32) -> (i32, i32) {
    %c0_i32 = arith.constant 0 : i32
    %c0_i32_0 = arith.constant 0 : i32
    %c0_i32_1 = arith.constant 0 : i32
    return %c0_i32, %c0_i32_0 : i32, i32
  }
  func.func @transform_5(%arg0: i32) -> (i32, i32) {
    %c0_i32 = arith.constant 0 : i32
    %c0_i32_0 = arith.constant 0 : i32
    %c0_i32_1 = arith.constant 0 : i32
    return %c0_i32, %c0_i32_0 : i32, i32
  }
  func.func @transform_6(%arg0: i32) -> (i32, i32) {
    %c0_i32 = arith.constant 0 : i32
    %c0_i32_0 = arith.constant 0 : i32
    %c0_i32_1 = arith.constant 0 : i32
    return %c0_i32, %c0_i32_0 : i32, i32
  }
  func.func @transform_7(%arg0: i32) -> (i32, i32) {
    %c0_i32 = arith.constant 0 : i32
    %c0_i32_0 = arith.constant 0 : i32
    %c0_i32_1 = arith.constant 0 : i32
    return %c0_i32, %c0_i32_0 : i32, i32
  }
  func.func @transform_8(%arg0: i32) -> (i32, i32) {
    %c0_i32 = arith.constant 0 : i32
    %c0_i32_0 = arith.constant 0 : i32
    %c0_i32_1 = arith.constant 0 : i32
    return %c0_i32, %c0_i32_0 : i32, i32
  }
  func.func @transform_9(%arg0: i32) -> (i32, i32) {
    %c0_i32 = arith.constant 0 : i32
    %c0_i32_0 = arith.constant 0 : i32
    %c0_i32_1 = arith.constant 0 : i32
    return %c0_i32, %c0_i32_0 : i32, i32
  }
  func.func @transform_10(%arg0: i32) -> (i32, i32) {
    %c0_i32 = arith.constant 0 : i32
    %c0_i32_0 = arith.constant 0 : i32
    %c0_i32_1 = arith.constant 0 : i32
    return %c0_i32, %c0_i32_0 : i32, i32
  }
  func.func @transform_11(%arg0: i32) -> (i32, i32) {
    %c0_i32 = arith.constant 0 : i32
    %c0_i32_0 = arith.constant 0 : i32
    %c0_i32_1 = arith.constant 0 : i32
    return %c0_i32, %c0_i32_0 : i32, i32
  }
  func.func @transform_12(%arg0: i32) -> (i32, i32) {
    %c0_i32 = arith.constant 0 : i32
    %c0_i32_0 = arith.constant 0 : i32
    %c0_i32_1 = arith.constant 0 : i32
    return %c0_i32, %c0_i32_0 : i32, i32
  }
  func.func @transform_13(%arg0: i32) -> (i32, i32) {
    %c0_i32 = arith.constant 0 : i32
    %c0_i32_0 = arith.constant 0 : i32
    %c0_i32_1 = arith.constant 0 : i32
    return %c0_i32, %c0_i32_0 : i32, i32
  }
  func.func @transform_14(%arg0: i32) -> (i32, i32) {
    %c0_i32 = arith.constant 0 : i32
    %c0_i32_0 = arith.constant 0 : i32
    %c0_i32_1 = arith.constant 0 : i32
    return %c0_i32, %c0_i32_0 : i32, i32
  }
  func.func @transform_15(%arg0: i32) -> (i32, i32) {
    %c0_i32 = arith.constant 0 : i32
    %c0_i32_0 = arith.constant 0 : i32
    %c0_i32_1 = arith.constant 0 : i32
    return %c0_i32, %c0_i32_0 : i32, i32
  }
  func.func @transform_16(%arg0: i32) -> (i32, i32) {
    %c0_i32 = arith.constant 0 : i32
    %c0_i32_0 = arith.constant 0 : i32
    %c0_i32_1 = arith.constant 0 : i32
    return %c0_i32, %c0_i32_0 : i32, i32
  }
}

</mosaic_0001>

<bundles_post_ra>
// kernel: tpu_custom_call.1
= control target key start
LH: loop header
LB: loop body
LE: loop exit
PB: predicated region body
PF: predicated region fallthrough
CT: control target
= control target key end

     0   :  { %s1308_s0 = inlined_call_operand.hbm [shape: f32[16,32], index: 0, kind: input, shape index: {}]   ;;  %s1309_s1 = inlined_call_operand.vmem [shape: f32[32,96], index: 1, kind: input, shape index: {}]   ;;  %s1310_s2 = inlined_call_operand.vmem [shape: f32[1,96], index: 2, kind: input, shape index: {}]   ;;  %s1311_s3 = inlined_call_operand.vmem [shape: f32[32,32], index: 3, kind: input, shape index: {}]   ;;  %s1312_s4 = inlined_call_operand.vmem [shape: f32[1,32], index: 4, kind: input, shape index: {}]   ;;  %s1313_s5 = inlined_call_operand.vmem [shape: f32[32,64], index: 5, kind: input, shape index: {}]   ;;  %s1314_s6 = inlined_call_operand.vmem [shape: f32[1,64], index: 6, kind: input, shape index: {}]   ;;  %s1315_s7 = inlined_call_operand.vmem [shape: f32[64,32], index: 7, kind: input, shape index: {}]   ;;  %s1316_s8 = inlined_call_operand.vmem [shape: f32[1,32], index: 8, kind: input, shape index: {}]   ;;  %s1317_s9 = inlined_call_operand.vmem [shape: f32[1,32], index: 9, kind: input, shape index: {}]   ;;  %s1318_s10 = inlined_call_operand.vmem [shape: f32[1,32], index: 10, kind: input, shape index: {}]   ;;  %s1319_s11 = inlined_call_operand.vmem [shape: f32[1,32], index: 11, kind: input, shape index: {}]   ;;  %s1320_s12 = inlined_call_operand.vmem [shape: f32[1,32], index: 12, kind: input, shape index: {}]   ;;  %s1321_s13 = inlined_call_operand.vmem [shape: f32[64,32], index: 13, kind: input, shape index: {}]   ;;  %s1322_s14 = inlined_call_operand.vmem [shape: f32[16,64], index: 14, kind: input, shape index: {}]   ;;  %s1323_s15 = inlined_call_operand.vmem [shape: f32[64,64], index: 15, kind: input, shape index: {}]   ;;  %s1324_s16 = inlined_call_operand.hbm [shape: f32[16,32], index: 16, kind: output, shape index: {}]  }
   0x1   :  { %1326 = sst [smem:[#allocation8_spill]] %s1308_s0 }
   0x2   :  { %21 = vsyncpa [#allocation3], 0 }
   0x3   :  { %22 = vsyncpa [#allocation4], 0  ;;  %s913_s21 = smov [#allocation2]   ;;  %s1327_s25 = sld [smem:[#allocation8_spill]] }
   0x4   :  { %s28_s22 = sshll.u32 %s913_s21, 4  ;;  %s29_s22 = int_to_ptr.vmem [resolvable:$true] %s28_s22 }
   0x9   :  { %s865_s26 = scalar_lea.hbm %s1327_s25, 256 }
   0xa   :  { %p866_p0 = scmp.ne.s32.totalorder %s1327_s25, %s865_s26  ;;  %p869_p1 = scmp.lt.u32.totalorder %s865_s26, %s1327_s25 }
   0xc   :  { %p871_p2 = pnand %p869_p1, %p866_p0 }
   0xe   :  { %874 = shalt.err (!%p871_p2)
}
   0xf   :  { %s875_s0 = scalar_lea.vmem %s29_s22, 256  ;;  %p880_p4 = scmp.lt.s32.totalorder %s29_s22, %s29_s22 }
  0x10   :  { %p876_p3 = scmp.ne.s32.totalorder %s29_s22, %s875_s0  ;;  %p881_p5 = scmp.lt.s32.totalorder %s875_s0, %s875_s0 }
  0x12   :  { %p882_p6 = por %p881_p5, %p880_p4 }
  0x14   :  { %p883_p7 = pnand %p882_p6, %p876_p3 }
  0x16   :  { %886 = shalt.err (!%p883_p7)
}
  0x17   :  { %s914_s17 = smov 128   ;;  %s915_s18 = smov 8  }
  0x18   :  { %34 = dma.hbm_to_vmem [thread:$0]  %s1327_s25, 256, %s29_s22, [#allocation3], %s914_s17, %s914_s17, %s915_s18  }
  0x19   :  { %909 = dma.done.wait [#allocation3], 256  }
  0x1a   :  { %910 = vsyncadd [#allocation3], 4294967040  ;;  %v916_v0 = vmov 0.0   ;;  %vm917_vm0 = vmmov 0   ;;  %v72_v1 = vld [vmem:[%s1309_s1] sm:$0xff]  ;;  %v73_v2 = vld [vmem:[%s1309_s1 + $0x8] sm:$0xff] }
  0x1b   :  { %768 = vmatprep.subr.bf16.mxu0 %v916_v0  ;;  %772 = vmatprep.mubr.msk.bf16.mxu0 %vm917_vm0, %v916_v0  ;;  %v74_v3 = vld [vmem:[%s1309_s1 + $0x10] sm:$0xff]  ;;  %v76_v4 = vpack.c.bf16 %v73_v2, %v72_v1  ;;  %v75_v5 = vld [vmem:[%s1309_s1 + $0x18] sm:$0xff]  ;;  %v1043_v6 = vld [vmem:[%s1321_s13] sm:$0xff]  ;;  %s918_s20 = smov 32   ;;  %vm85_vm1 = vcmask 261120   ;;  %vm285_vm2 = vcmask 523264  }
  0x1c   :  { %776 = vmatprep.subr.bf16.mxu1 %v916_v0  ;;  %784 = vmatprep.mubr.msk.bf16.mxu1 %vm917_vm0, %v916_v0  ;;  %v1048_v7 = vld [vmem:[%s1321_s13 + $0x10] sm:$0xff]  ;;  %v77_v8 = vpack.c.bf16 %v75_v5, %v74_v3  ;;  %v1050_v9 = vld [vmem:[#allocation2] sm:$0xff]  ;;  %v1052_v10 = vld [vmem:[#allocation2 + $0x8] sm:$0xff]  ;;  %s920_s24 = smov 64  }
  0x1d   :  { %769 = vmatpush3.bf16.msra.mxu0 %v76_v4  ;;  %148 = vrot.lane.b32.xlu0 %v1043_v6, %s918_s20  ;;  %v1060_v11 = vld [vmem:[%s1321_s13 + $0x8] sm:$0xff]  ;;  %v1065_v12 = vld [vmem:[%s1321_s13 + $0x18] sm:$0xff]  ;;  %v71_v13 = vpack.c.bf16 %v1052_v10, %v1050_v9  ;;  %v1074_v14 = vld [vmem:[%s1321_s13 + $0x20] sm:$0xff] }
  0x1e   :  { %770 = vmatprep.subr.bf16.mxu0 %v916_v0  ;;  %152 = vrot.lane.b32.xlu1 %v1048_v7, %s918_s20  ;;  %v1080_v15 = vld [vmem:[%s1321_s13 + $0x28] sm:$0xff]  ;;  %v1090_v16 = vld [vmem:[%s1321_s13 + $0x30] sm:$0xff]  ;;  %v1095_v17 = vld [vmem:[%s1321_s13 + $0x38] sm:$0xff] }
  0x1f   :  { %v724_v23 = vld [vmem:[%s1310_s2] ss:$0 sm:$0xff]  ;;  %s919_s2 = smov 96   ;;  %v304_v63 = vld [vmem:[%s1323_s15 + $0x8] sm:$0xff]  ;;  %v305_v2 = vld [vmem:[%s1323_s15 + $0x10] sm:$0xff] }
  0x20   :  { %v303_v62 = vld [vmem:[%s1323_s15] sm:$0xff]  ;;  %v306_v3 = vld [vmem:[%s1323_s15 + $0x18] sm:$0xff] }
  0x21   :  { %771 = vmatpush3.bf16.msra.mxu0 %v77_v8  ;;  %150 = vrot.lane.b32.xlu0 %v1060_v11, %s918_s20  ;;  %v311_v1 = vpack.c.bf16 %v304_v63, %v303_v62  ;;  %v312_v4 = vpack.c.bf16 %v306_v3, %v305_v2  ;;  %v307_v5 = vld [vmem:[%s1323_s15 + $0x20] sm:$0xff]  ;;  %v433_v3 = vld [vmem:[%s1311_s3 + $0x10] sm:$0xff] }
  0x22   :  { %154 = vrot.lane.b32.xlu1 %v1065_v12, %s918_s20  ;;  %788 = vmatprep.subr.bf16.mxu0 %v916_v0 }
  0x24   :  { %773 = vmatmul.mubr.msk.bf16.vlgmr.msra.gmra.mrb[0].mxu0 %vm85_vm1, %v71_v13 }
  0x25   :  { %156 = vrot.lane.b32.xlu0 %v1074_v14, %s918_s20  ;;  %796 = vmatprep.mubr.msk.bf16.mxu0 %vm917_vm0, %v916_v0 }
  0x26   :  { %158 = vrot.lane.b32.xlu1 %v1080_v15, %s918_s20  ;;  %789 = vmatpush3.bf16.msra.mxu0 %v311_v1 }
  0x27   :  { %790 = vmatprep.subr.bf16.mxu0 %v916_v0 }
  0x29   :  { %160 = vrot.lane.b32.xlu0 %v1090_v16, %s918_s20 }
  0x2a   :  { %162 = vrot.lane.b32.xlu1 %v1095_v17, %s918_s20  ;;  %791 = vmatpush3.bf16.msra.mxu0 %v312_v4  ;;  %v434_v4 = vld [vmem:[%s1311_s3 + $0x18] sm:$0xff] }
  0x2b   :  { %792 = vmatprep.subr.bf16.mxu0 %v916_v0 }
  0x8f   :  { %v149_v19 = vpop.permute.xlu0 %148 }
  0x90   :  { %v153_v18 = vpop.permute.xlu1 %152 }
  0x93   :  { %v151_v21 = vpop.permute.xlu0 %150 }
  0x94   :  { %v155_v20 = vpop.permute.xlu1 %154 }
  0x97   :  { %v157_v24 = vpop.permute.xlu0 %156 }
  0x98   :  { %v159_v22 = vpop.permute.xlu1 %158 }
  0x9b   :  { %v161_v36 = vpop.permute.xlu0 %160 }
  0x9c   :  { %v163_v31 = vpop.permute.xlu1 %162 }
  0xf7   :  { %v123_v25 = vpop.f32.mrb[0].mxu0 }
  0xf8   :  { %v1102_v26 = vadd.f32 %v724_v23, %v123_v25  ;;  %v774_v27 = vpop.f32.mrb[1].mxu0 }
  0xf9   :  { %v126_v28 = vpop.f32.mrb[2].mxu0 }
  0xfa   :  { %v1104_v29 = vadd.f32 %v724_v23, %v126_v28  ;;  %v775_v30 = vpop.f32.mrb[3].mxu0  ;;  %v174_v32 = vmul.f32 %v153_v18, %v1102_v26  ;;  %v172_v34 = vmul.f32 %v149_v19, %v1102_v26  ;;  %v178_v41 = vmul.f32 %v161_v36, %v1102_v26 }
  0xfb   :  { %v176_v42 = vmul.f32 %v157_v24, %v1102_v26  ;;  %v130_v54 = vmul.f32 0.35355338, %v1102_v26 }
  0xfc   :  { %v175_v33 = vmul.f32 %v155_v20, %v1104_v29  ;;  %v173_v35 = vmul.f32 %v151_v21, %v1104_v29  ;;  %v179_v37 = vmul.f32 %v163_v31, %v1104_v29  ;;  %v177_v40 = vmul.f32 %v159_v22, %v1104_v29 }
  0xfd   :  { %v131_v53 = vmul.f32 0.35355338, %v1104_v29 }
  0xfe   :  { %v214_v38 = vpack.c.bf16 %v175_v33, %v174_v32  ;;  %v213_v39 = vpack.c.bf16 %v173_v35, %v172_v34  ;;  %v216_v43 = vpack.c.bf16 %v179_v37, %v178_v41  ;;  %v215_v44 = vpack.c.bf16 %v177_v40, %v176_v42  ;;  %v294_v34 = vld [vmem:[%s1322_s14] sm:$0xff]  ;;  %v295_v35 = vld [vmem:[%s1322_s14 + $0x8] sm:$0xff]  ;;  %s921_s14 = smov [#allocation5]  }
  0xff   :  { %v212_v55 = vpack.c.bf16 %v131_v53, %v130_v54  ;;  %v315_v53 = vsub.f32 1.0, %v294_v34  ;;  %v316_v54 = vsub.f32 1.0, %v295_v35  ;;  %s712_s22 = sshll.u32 %s921_s14, 4  ;;  %s713_s22 = int_to_ptr.vmem [resolvable:$true] %s712_s22 }
 0x100   :  { %223 = vrot.lane.b32.xlu1 %v214_v38, %s919_s2  ;;  %221 = vrot.lane.b32.xlu0 %v213_v39, %s919_s2  ;;  %s887_s25 = scalar_lea.vmem %s713_s22, 256  ;;  %p892_p9 = scmp.lt.s32.totalorder %s713_s22, %s713_s22 }
 0x101   :  { %p888_p8 = scmp.ne.s32.totalorder %s713_s22, %s887_s25  ;;  %p893_p10 = scmp.lt.s32.totalorder %s887_s25, %s887_s25 }
 0x103   :  { %p894_p11 = por %p893_p10, %p892_p9 }
 0x104   :  { %227 = vrot.lane.b32.xlu1 %v216_v43, %s919_s2  ;;  %225 = vrot.lane.b32.xlu0 %v215_v44, %s919_s2 }
 0x105   :  { %p895_p12 = pnand %p894_p11, %p888_p8 }
 0x172   :  { %v222_v45 = vpop.permute.xlu0 %221  ;;  %v224_v47 = vpop.permute.xlu1 %223 }
 0x173   :  { %v233_v46 = vsel %vm85_vm1, %v222_v45, 0  ;;  %v236_v48 = vsel %vm85_vm1, %v224_v47, 0 }
 0x174   :  { %777 = vmatpush3.bf16.xpose.msra.mxu1 %v233_v46 }
 0x175   :  { %778 = vmatprep.subr.bf16.mxu1 %v916_v0 }
 0x176   :  { %v226_v49 = vpop.permute.xlu0 %225  ;;  %v228_v51 = vpop.permute.xlu1 %227 }
 0x177   :  { %v239_v50 = vsel %vm85_vm1, %v226_v49, 0  ;;  %v242_v52 = vsel %vm85_vm1, %v228_v51, 0  ;;  %v431_v49 = vld [vmem:[%s1311_s3] sm:$0xff] }
 0x17c   :  { %779 = vmatpush3.bf16.xpose.msra.mxu1 %v236_v48 }
 0x17d   :  { %780 = vmatprep.subr.bf16.mxu1 %v916_v0 }
 0x184   :  { %781 = vmatpush3.bf16.xpose.msra.mxu1 %v239_v50 }
 0x185   :  { %782 = vmatprep.subr.bf16.mxu1 %v916_v0 }
 0x18c   :  { %783 = vmatpush3.bf16.xpose.msra.mxu1 %v242_v52 }
 0x18d   :  { %812 = vmatprep.subr.bf16.mxu1 %v916_v0 }
 0x193   :  { %785 = vmatmul.mubr.msk.bf16.vlgmr.msra.gmra.mrb[0].mxu1 %vm85_vm1, %v212_v55 }
 0x194   :  { %816 = vmatprep.mubr.msk.bf16.mxu1 %vm917_vm0, %v916_v0 }
 0x266   :  { %v278_v56 = vpop.f32.mrb[0].mxu1 }
 0x267   :  { %v786_v57 = vpop.f32.mrb[1].mxu1  ;;  %v286_v58 = vsel %vm285_vm2, %v278_v56, -inf }
 0x268   :  { %287 = vmax.xlane.f32.xlu0 %v286_v58  ;;  %v281_v59 = vpop.f32.mrb[2].mxu1 }
 0x269   :  { %v787_v60 = vpop.f32.mrb[3].mxu1  ;;  %v289_v61 = vsel %vm285_vm2, %v281_v59, -inf }
 0x26a   :  { %290 = vmax.xlane.f32.xlu1 %v289_v61 }
 0x27b   :  { %182 = vrot.lane.b32.xlu1 %v1060_v11, %s920_s24  ;;  %v310_v11 = vld [vmem:[%s1323_s15 + $0x38] sm:$0xff] }
 0x27e   :  { %180 = vrot.lane.b32.xlu0 %v1043_v6, %s920_s24  ;;  %v308_v6 = vld [vmem:[%s1323_s15 + $0x28] sm:$0xff] }
 0x27f   :  { %186 = vrot.lane.b32.xlu1 %v1065_v12, %s920_s24  ;;  %v313_v8 = vpack.c.bf16 %v308_v6, %v307_v5  ;;  %v436_v5 = vpack.c.bf16 %v434_v4, %v433_v3  ;;  %v733_v4 = vld [vmem:[%s1314_s6] ss:$0 sm:$0xff] }
 0x281   :  { %793 = vmatpush3.bf16.msra.mxu0 %v313_v8 }
 0x282   :  { %184 = vrot.lane.b32.xlu0 %v1048_v7, %s920_s24  ;;  %794 = vmatprep.subr.bf16.mxu0 %v916_v0  ;;  %v309_v7 = vld [vmem:[%s1323_s15 + $0x30] sm:$0xff] }
 0x283   :  { %190 = vrot.lane.b32.xlu1 %v1080_v15, %s920_s24  ;;  %v314_v12 = vpack.c.bf16 %v310_v11, %v309_v7 }
 0x285   :  { %795 = vmatpush3.bf16.msra.mxu0 %v314_v12 }
 0x286   :  { %188 = vrot.lane.b32.xlu0 %v1074_v14, %s920_s24  ;;  %800 = vmatprep.subr.bf16.mxu0 %v916_v0 }
 0x287   :  { %194 = vrot.lane.b32.xlu1 %v1095_v17, %s920_s24 }
 0x28a   :  { %192 = vrot.lane.b32.xlu0 %v1090_v16, %s920_s24 }
 0x2f5   :  { %v288_v13 = vpop.xlane.xlu0 %287 }
 0x2f6   :  { %v292_v14 = vsub.f32 %v278_v56, %v288_v13  ;;  %v729_v13 = vld [vmem:[%s1312_s4] ss:$0 sm:$0xff] }
 0x2f7   :  { %v291_v15 = vpop.xlane.xlu1 %290 }
 0x2f8   :  { %v296_v18 = vmul.f32 1.442695, %v292_v14  ;;  %v293_v19 = vsub.f32 %v281_v59, %v291_v15 }
 0x2f9   :  { %v181_v20 = vpop.permute.xlu0 %180 }
 0x2fa   :  { %849 = vpow2.f32 %v296_v18  ;;  %v298_v21 = vmul.f32 1.442695, %v293_v19  ;;  %v204_v23 = vmul.f32 %v181_v20, %v1102_v26 }
 0x2fb   :  { %v183_v22 = vpop.permute.xlu1 %182 }
 0x2fc   :  { %851 = vpow2.f32 %v298_v21  ;;  %v205_v17 = vmul.f32 %v183_v22, %v1104_v29 }
 0x2fd   :  { %v185_v24 = vpop.permute.xlu0 %184 }
 0x2fe   :  { %v366_v25 = vpack.c.bf16 %v205_v17, %v204_v23  ;;  %v206_v16 = vmul.f32 %v185_v24, %v1102_v26 }
 0x2ff   :  { %v187_v27 = vpop.permute.xlu1 %186 }
 0x300   :  { %v207_v28 = vmul.f32 %v187_v27, %v1104_v29  ;;  %374 = vrot.lane.b32.xlu0 %v366_v25, %s920_s24 }
 0x301   :  { %v189_v30 = vpop.permute.xlu0 %188 }
 0x302   :  { %v367_v31 = vpack.c.bf16 %v207_v28, %v206_v16  ;;  %v208_v36 = vmul.f32 %v189_v30, %v1102_v26 }
 0x303   :  { %v191_v32 = vpop.permute.xlu1 %190 }
 0x304   :  { %v850_v33 = vpop.eup %849  ;;  %v209_v37 = vmul.f32 %v191_v32, %v1104_v29  ;;  %376 = vrot.lane.b32.xlu1 %v367_v31, %s920_s24 }
 0x305   :  { %v193_v38 = vpop.permute.xlu0 %192  ;;  %v300_v41 = vmul.f32 %v850_v33, %v294_v34 }
 0x306   :  { %v852_v39 = vpop.eup %851  ;;  %v368_v40 = vpack.c.bf16 %v209_v37, %v208_v36  ;;  %v210_v44 = vmul.f32 %v193_v38, %v1102_v26  ;;  %v432_v26 = vld [vmem:[%s1311_s3 + $0x8] sm:$0xff]  ;;  %v538_v37 = vld [vmem:[%s1313_s5 + $0x10] sm:$0xff]  ;;  %v539_v38 = vld [vmem:[%s1313_s5 + $0x18] sm:$0xff] }
 0x307   :  { %v301_v42 = vmul.f32 %v852_v39, %v295_v35  ;;  %v195_v43 = vpop.permute.xlu1 %194  ;;  %v537_v35 = vld [vmem:[%s1313_s5 + $0x8] sm:$0xff]  ;;  %v541_v39 = vpack.c.bf16 %v539_v38, %v538_v37 }
 0x308   :  { %v211_v45 = vmul.f32 %v195_v43, %v1104_v29  ;;  %378 = vrot.lane.b32.xlu0 %v368_v40, %s920_s24  ;;  %v435_v29 = vpack.c.bf16 %v432_v26, %v431_v49  ;;  %v596_v40 = vld [vmem:[%s1315_s7] sm:$0xff] }
 0x309   :  { %v302_v46 = vpack.c.bf16 %v301_v42, %v300_v41 }
 0x30a   :  { %v369_v47 = vpack.c.bf16 %v211_v45, %v210_v44  ;;  %813 = vmatpush3.bf16.msra.mxu1 %v435_v29  ;;  %v599_v44 = vld [vmem:[%s1315_s7 + $0x18] sm:$0xff] }
 0x30b   :  { %797 = vmatmul.mubr.msk.bf16.vlgmr.msra.gmra.mrb[4].mxu0 %vm285_vm2, %v302_v46  ;;  %814 = vmatprep.subr.bf16.mxu1 %v916_v0 }
 0x30c   :  { %380 = vrot.lane.b32.xlu1 %v369_v47, %s920_s24  ;;  %808 = vmatprep.mubr.msk.bf16.mxu0 %vm917_vm0, %v916_v0 }
 0x30e   :  { %815 = vmatpush3.bf16.msra.mxu1 %v436_v5 }
 0x30f   :  { %828 = vmatprep.subr.bf16.mxu1 %v916_v0 }
 0x372   :  { %v375_v48 = vpop.permute.xlu0 %374 }
 0x373   :  { %801 = vmatpush3.bf16.msra.mxu0 %v375_v48 }
 0x374   :  { %802 = vmatprep.subr.bf16.mxu0 %v916_v0 }
 0x376   :  { %v377_v50 = vpop.permute.xlu1 %376 }
 0x377   :  { %803 = vmatpush3.bf16.msra.mxu0 %v377_v50 }
 0x378   :  { %804 = vmatprep.subr.bf16.mxu0 %v916_v0 }
 0x37a   :  { %v379_v51 = vpop.permute.xlu0 %378 }
 0x37b   :  { %805 = vmatpush3.bf16.msra.mxu0 %v379_v51 }
 0x37c   :  { %806 = vmatprep.subr.bf16.mxu0 %v916_v0 }
 0x37e   :  { %v381_v52 = vpop.permute.xlu1 %380 }
 0x37f   :  { %807 = vmatpush3.bf16.msra.mxu0 %v381_v52  ;;  %v731_v52 = vld [vmem:[%s1317_s9] ss:$0 sm:$0xff] }
 0x380   :  { %820 = vmatprep.subr.bf16.mxu0 %v916_v0 }
 0x3de   :  { %v354_v55 = vpop.f32.mrb[4].mxu0 }
 0x3df   :  { %v355_v56 = vadd.f32 %v354_v55, %v315_v53  ;;  %v798_v57 = vpop.f32.mrb[5].mxu0 }
 0x3e0   :  { %v357_v58 = vpop.f32.mrb[6].mxu0 }
 0x3e1   :  { %853 = vrcp.f32 %v355_v56  ;;  %v358_v59 = vadd.f32 %v357_v58, %v316_v54  ;;  %v799_v60 = vpop.f32.mrb[7].mxu0  ;;  %v732_v56 = vld [vmem:[%s1318_s10] ss:$0 sm:$0xff] }
 0x3e3   :  { %855 = vrcp.f32 %v358_v59 }
 0x3eb   :  { %v854_v61 = vpop.eup %853 }
 0x3ec   :  { %v363_v63 = vmul.f32 %v854_v61, %v300_v41  ;;  %v597_v41 = vld [vmem:[%s1315_s7 + $0x8] sm:$0xff]  ;;  %v600_v61 = vld [vmem:[%s1315_s7 + $0x20] sm:$0xff] }
 0x3ed   :  { %v856_v62 = vpop.eup %855  ;;  %v604_v43 = vpack.c.bf16 %v597_v41, %v596_v40 }
 0x3ee   :  { %v364_v1 = vmul.f32 %v856_v62, %v301_v42  ;;  %v598_v42 = vld [vmem:[%s1315_s7 + $0x10] sm:$0xff]  ;;  %v601_v62 = vld [vmem:[%s1315_s7 + $0x28] sm:$0xff] }
 0x3ef   :  { %v605_v45 = vpack.c.bf16 %v599_v44, %v598_v42 }
 0x3f0   :  { %v365_v2 = vpack.c.bf16 %v364_v1, %v363_v63  ;;  %v606_v63 = vpack.c.bf16 %v601_v62, %v600_v61  ;;  %v602_v1 = vld [vmem:[%s1315_s7 + $0x30] sm:$0xff] }
 0x3f2   :  { %809 = vmatmul.mubr.msk.bf16.vlgmr.msra.gmra.mrb[8].mxu0 %vm285_vm2, %v365_v2  ;;  %v603_v2 = vld [vmem:[%s1315_s7 + $0x38] sm:$0xff] }
 0x3f3   :  { %824 = vmatprep.mubr.msk.bf16.mxu0 %vm917_vm0, %v916_v0  ;;  %v607_v3 = vpack.c.bf16 %v603_v2, %v602_v1 }
 0x4c5   :  { %v423_v6 = vpop.f32.mrb[8].mxu0 }
 0x4c6   :  { %v810_v8 = vpop.f32.mrb[9].mxu0 }
 0x4c7   :  { %v426_v7 = vpop.f32.mrb[10].mxu0 }
 0x4c8   :  { %v430_v11 = vpack.c.bf16 %v426_v7, %v423_v6  ;;  %v811_v12 = vpop.f32.mrb[11].mxu0 }
 0x4ca   :  { %817 = vmatmul.mubr.msk.bf16.vlgmr.msra.gmra.mrb[4].mxu1 %vm85_vm1, %v430_v11 }
 0x4cb   :  { %836 = vmatprep.mubr.msk.bf16.mxu1 %vm917_vm0, %v916_v0  ;;  %829 = vmatpush3.bf16.msra.mxu1 %v604_v43  ;;  %v737_v43 = vld [vmem:[%s1319_s11] ss:$0 sm:$0xff] }
 0x4cc   :  { %830 = vmatprep.subr.bf16.mxu1 %v916_v0 }
 0x4cf   :  { %831 = vmatpush3.bf16.msra.mxu1 %v605_v45 }
 0x4d0   :  { %832 = vmatprep.subr.bf16.mxu1 %v916_v0 }
 0x4d3   :  { %833 = vmatpush3.bf16.msra.mxu1 %v606_v63 }
 0x4d4   :  { %834 = vmatprep.subr.bf16.mxu1 %v916_v0 }
 0x4d7   :  { %835 = vmatpush3.bf16.msra.mxu1 %v607_v3 }
 0x59d   :  { %v481_v14 = vpop.f32.mrb[4].mxu1 }
 0x59e   :  { %v482_v15 = vadd.f32 %v729_v13, %v481_v14  ;;  %v818_v18 = vpop.f32.mrb[5].mxu1 }
 0x59f   :  { %v484_v19 = vpop.f32.mrb[6].mxu1 }
 0x5a0   :  { %v485_v20 = vadd.f32 %v729_v13, %v484_v19  ;;  %v819_v21 = vpop.f32.mrb[7].mxu1  ;;  %v488_v22 = vadd.f32 %v482_v15, %v1050_v9  ;;  %v735_v15 = vld [vmem:[%s1316_s8] ss:$0 sm:$0xff] }
 0x5a2   :  { %v492_v23 = vsel %vm85_vm1, %v488_v22, 0.0  ;;  %v489_v17 = vadd.f32 %v485_v20, %v1052_v10  ;;  %v536_v10 = vld [vmem:[%s1313_s5] sm:$0xff] }
 0x5a3   :  { %493 = vadd.xlane.f32.xlu0 %v492_v23  ;;  %v540_v36 = vpack.c.bf16 %v537_v35, %v536_v10 }
 0x5a4   :  { %v495_v24 = vsel %vm85_vm1, %v489_v17, 0.0 }
 0x5a5   :  { %496 = vadd.xlane.f32.xlu1 %v495_v24  ;;  %821 = vmatpush3.bf16.msra.mxu0 %v540_v36 }
 0x5a6   :  { %822 = vmatprep.subr.bf16.mxu0 %v916_v0 }
 0x5a9   :  { %823 = vmatpush3.bf16.msra.mxu0 %v541_v39 }
 0x630   :  { %v494_v25 = vpop.xlane.xlu0 %493 }
 0x631   :  { %v499_v27 = vmul.f32 0.03125, %v494_v25 }
 0x632   :  { %v497_v16 = vpop.xlane.xlu1 %496 }
 0x633   :  { %v501_v28 = vsub.f32 %v488_v22, %v499_v27  ;;  %v500_v30 = vmul.f32 0.03125, %v497_v16 }
 0x635   :  { %v502_v31 = vsub.f32 %v489_v17, %v500_v30  ;;  %v503_v32 = vmul.f32 %v501_v28, %v501_v28 }
 0x637   :  { %v505_v33 = vsel %vm85_vm1, %v503_v32, 0.0  ;;  %v504_v34 = vmul.f32 %v502_v31, %v502_v31 }
 0x638   :  { %506 = vadd.xlane.f32.xlu0 %v505_v33 }
 0x639   :  { %v508_v9 = vsel %vm85_vm1, %v504_v34, 0.0 }
 0x63c   :  { %509 = vadd.xlane.f32.xlu0 %v508_v9 }
 0x6c5   :  { %v507_v46 = vpop.xlane.xlu0 %506 }
 0x6c6   :  { %v511_v47 = vmul.f32 0.03125, %v507_v46  ;;  %v738_v46 = vld [vmem:[%s1320_s12] ss:$0 sm:$0xff] }
 0x6c8   :  { %v513_v48 = vadd.f32 1e-05, %v511_v47 }
 0x6c9   :  { %v510_v49 = vpop.xlane.xlu0 %509 }
 0x6ca   :  { %857 = vrsqrt.f32 %v513_v48  ;;  %v512_v26 = vmul.f32 0.03125, %v510_v49 }
 0x6cc   :  { %v514_v29 = vadd.f32 1e-05, %v512_v26 }
 0x6ce   :  { %859 = vrsqrt.f32 %v514_v29 }
 0x6d4   :  { %v858_v50 = vpop.eup %857 }
 0x6d5   :  { %v517_v51 = vmul.f32 %v858_v50, %v501_v28 }
 0x6d7   :  { %v525_v54 = vmul.f32 %v731_v52, %v517_v51 }
 0x6d8   :  { %v860_v53 = vpop.eup %859 }
 0x6d9   :  { %v518_v55 = vmul.f32 %v860_v53, %v502_v31  ;;  %v533_v58 = vadd.f32 %v732_v56, %v525_v54 }
 0x6db   :  { %v526_v57 = vmul.f32 %v731_v52, %v518_v55 }
 0x6dd   :  { %v534_v59 = vadd.f32 %v732_v56, %v526_v57 }
 0x6df   :  { %v535_v60 = vpack.c.bf16 %v534_v59, %v533_v58 }
 0x6e1   :  { %825 = vmatmul.mubr.msk.bf16.vlgmr.msra.gmra.mrb[12].mxu0 %vm85_vm1, %v535_v60 }
 0x7b4   :  { %v586_v5 = vpop.f32.mrb[12].mxu0 }
 0x7b5   :  { %v587_v6 = vadd.f32 %v733_v4, %v586_v5  ;;  %v826_v8 = vpop.f32.mrb[13].mxu0 }
 0x7b6   :  { %v589_v7 = vpop.f32.mrb[14].mxu0 }
 0x7b7   :  { %v590_v11 = vadd.f32 %v733_v4, %v589_v7  ;;  %v827_v0 = vpop.f32.mrb[15].mxu0  ;;  %v593_v12 = vmax.f32 %v587_v6, 0.0 }
 0x7b9   :  { %v594_v13 = vmax.f32 %v590_v11, 0.0 }
 0x7bb   :  { %v595_v14 = vpack.c.bf16 %v594_v13, %v593_v12 }
 0x7bd   :  { %837 = vmatmul.mubr.msk.bf16.vlgmr.msra.gmra.mrb[8].mxu1 %vm285_vm2, %v595_v14 }
 0x890   :  { %v652_v18 = vpop.f32.mrb[8].mxu1 }
 0x891   :  { %v653_v19 = vadd.f32 %v735_v15, %v652_v18  ;;  %v838_v20 = vpop.f32.mrb[9].mxu1 }
 0x892   :  { %v655_v21 = vpop.f32.mrb[10].mxu1 }
 0x893   :  { %v656_v22 = vadd.f32 %v735_v15, %v655_v21  ;;  %v839_v23 = vpop.f32.mrb[11].mxu1  ;;  %v659_v17 = vadd.f32 %v653_v19, %v533_v58 }
 0x895   :  { %v663_v24 = vsel %vm85_vm1, %v659_v17, 0.0  ;;  %v660_v25 = vadd.f32 %v656_v22, %v534_v59 }
 0x896   :  { %664 = vadd.xlane.f32.xlu1 %v663_v24 }
 0x897   :  { %v666_v27 = vsel %vm85_vm1, %v660_v25, 0.0 }
 0x898   :  { %667 = vadd.xlane.f32.xlu0 %v666_v27 }
 0x923   :  { %v665_v16 = vpop.xlane.xlu1 %664 }
 0x924   :  { %v669_v28 = vmul.f32 0.03125, %v665_v16 }
 0x925   :  { %v668_v30 = vpop.xlane.xlu0 %667 }
 0x926   :  { %v671_v31 = vsub.f32 %v659_v17, %v669_v28  ;;  %v670_v32 = vmul.f32 0.03125, %v668_v30 }
 0x928   :  { %v672_v33 = vsub.f32 %v660_v25, %v670_v32  ;;  %v673_v34 = vmul.f32 %v671_v31, %v671_v31 }
 0x92a   :  { %v675_v9 = vsel %vm85_vm1, %v673_v34, 0.0  ;;  %v674_v10 = vmul.f32 %v672_v33, %v672_v33 }
 0x92b   :  { %676 = vadd.xlane.f32.xlu1 %v675_v9 }
 0x92c   :  { %v678_v35 = vsel %vm85_vm1, %v674_v10, 0.0 }
 0x92d   :  { %679 = vadd.xlane.f32.xlu0 %v678_v35 }
 0x9b8   :  { %v677_v36 = vpop.xlane.xlu1 %676 }
 0x9b9   :  { %v681_v37 = vmul.f32 0.03125, %v677_v36 }
 0x9ba   :  { %v680_v38 = vpop.xlane.xlu0 %679 }
 0x9bb   :  { %v683_v39 = vadd.f32 1e-05, %v681_v37  ;;  %v682_v40 = vmul.f32 0.03125, %v680_v38 }
 0x9bd   :  { %861 = vrsqrt.f32 %v683_v39  ;;  %v684_v41 = vadd.f32 1e-05, %v682_v40 }
 0x9bf   :  { %863 = vrsqrt.f32 %v684_v41 }
 0x9c7   :  { %v862_v42 = vpop.eup %861 }
 0x9c8   :  { %v687_v44 = vmul.f32 %v862_v42, %v671_v31 }
 0x9c9   :  { %v864_v45 = vpop.eup %863 }
 0x9ca   :  { %v688_v47 = vmul.f32 %v864_v45, %v672_v33  ;;  %v695_v48 = vmul.f32 %v737_v43, %v687_v44 }
 0x9cc   :  { %v696_v49 = vmul.f32 %v737_v43, %v688_v47  ;;  %v703_v26 = vadd.f32 %v738_v46, %v695_v48 }
 0x9ce   :  { %v704_v29 = vadd.f32 %v738_v46, %v696_v49  ;;  %705 = vst.msk [vmem:[#allocation5] sm:$0xff] %vm85_vm1, %v703_v26 }
 0x9d0   :  { %706 = vst.msk [vmem:[#allocation5 + $0x8] sm:$0xff] %vm85_vm1, %v704_v29 }
 0x9d1   :  { %898 = shalt.err (!%p895_p12)
}
 0x9d2   :  { %s899_s26 = scalar_lea.hbm %s1324_s16, 256 }
 0x9d3   :  { %p900_p13 = scmp.ne.s32.totalorder %s1324_s16, %s899_s26  ;;  %p903_p0 = scmp.lt.u32.totalorder %s899_s26, %s1324_s16 }
 0x9d5   :  { %p905_p1 = pnand %p903_p0, %p900_p13 }
 0x9d7   :  { %908 = shalt.err (!%p905_p1)
}
 0x9d8   :  { %718 = dma.vmem_to_hbm [thread:$0]  %s713_s22, 256, %s1324_s16, [#allocation4], %s914_s17, %s914_s17, %s915_s18  }
 0x9d9   :  { %911 = dma.done.wait [#allocation4], 256  }
 0x9da   :  { %912 = vsyncadd [#allocation4], 4294967040 }
 0x9db   :  { %722 = vsyncpa [#allocation3], 1 }
 0x9dc   :  { %723 = vsyncpa [#allocation4], 1 }

</bundles_post_ra>
